<compile_context>
chip_gen: v6e
topology: v6e:2x2x1
jax: 0.10.0
libtpu: 0.0.40
codegen_flags: <defaults>
</compile_context>

<pallas_src>
import functools

import jax
import jax.numpy as jnp
from jax.experimental import pallas as pl
from jax.experimental.pallas import tpu as pltpu


# --------------------------------------------------------------------------- #
# Kernels
# --------------------------------------------------------------------------- #
def linear_relu_kernel(x_ref, w_ref, b_ref, o_ref, *, compute_dtype):
    """One (tm, tn) output tile: x @ w + b then ReLU, whole-K contraction."""
    acc = jnp.dot(x_ref[...].astype(compute_dtype),
                  w_ref[...].astype(compute_dtype),
                  preferred_element_type=jnp.float32)
    acc = acc + b_ref[...].astype(jnp.float32)        # (1, tn) broadcasts over rows
    o_ref[...] = jnp.maximum(acc, 0.0).astype(o_ref.dtype)


def linear_relu_ktiled_kernel(x_ref, w_ref, b_ref, o_ref, acc_ref, *, compute_dtype):
    """K-tiled contraction with a grid-resident VMEM f32 accumulator.

    Grid = (m, n, k) with k last ("arbitrary"): zero the accumulator at k == 0,
    accumulate a (tm,tk)x(tk,tn) partial product each step, and apply the fused
    bias + ReLU epilogue (and the only output write) at k == last.
    """
    k = pl.program_id(2)

    @pl.when(k == 0)
    def _():
        acc_ref[...] = jnp.zeros_like(acc_ref)

    acc_ref[...] += jnp.dot(x_ref[...].astype(compute_dtype),
                            w_ref[...].astype(compute_dtype),
                            preferred_element_type=jnp.float32)

    @pl.when(k == pl.num_programs(2) - 1)
    def _():
        acc = acc_ref[...] + b_ref[...].astype(jnp.float32)
        o_ref[...] = jnp.maximum(acc, 0.0).astype(o_ref.dtype)


# --------------------------------------------------------------------------- #
# Tiling / budget helpers
# --------------------------------------------------------------------------- #
def _cdiv(a, b):
    return (a + b - 1) // b


def _ceil_to(a, m):
    return _cdiv(a, m) * m


def _floor_to(a, m):
    return (a // m) * m


def _sublane(dtype):
    # Native sublane packing: 8 rows for 32-bit, 16 for bf16, 32 for int8/fp8.
    return max(8, 32 // jnp.dtype(dtype).itemsize)


def _vmem_capacity_bytes():
    try:
        return int(pltpu.get_tpu_info().vmem_capacity_bytes)
    except Exception:
        return 64 * 1024 * 1024   # conservative fallback (v7x per-TensorCore)


def _vmem_limit(footprint_bytes, vmem_cap):
    # Explicit scoped-VMEM limit sized from the actual block footprint
    # (defaults are only 16 MiB on v5e / 32 MiB on v6e-v7x and can reject or
    # shrink big tiles); capped below physical capacity for compiler scratch.
    want = max(32 * 1024 * 1024, int(footprint_bytes * 1.25) + (2 << 20))
    return int(min(want, int(0.9 * vmem_cap)))


def _pick_tm(M, sublane, target=256):
    # Tile-count aware: avoid ~2x padded work in the last tile (e.g. M=260 used
    # to round to 512), and keep >=2 M-steps so a "parallel" M axis can be
    # sharded across both v7x TensorCores.
    n_tiles = max(_cdiv(M, target), 2 if M > sublane else 1)
    return max(sublane, _ceil_to(_cdiv(M, n_tiles), sublane))


def _pick_tn(N, target=512):
    if N <= target:
        return N                      # full dim -> always layout-legal
    return max(128, _floor_to(target, 128))


def _pick_tk(K):
    # tk must divide K exactly (a ragged K tail would feed garbage into the
    # contraction); otherwise fall back to whole-K (grid_k == 1).
    for cand in (512, 384, 256, 128):
        if cand <= K and K % cand == 0:
            return cand
    return K


# --------------------------------------------------------------------------- #
# Forward wrapper
# --------------------------------------------------------------------------- #
def x_to_z_forward(x, w, b, *,
                   single_shot_bytes=int(1.5 * 2**20),
                   tm_target=256, tn_target=512,
                   use_bf16_matmul=False,
                   force_path=None):
    """relu(x @ w + b) via Pallas.   x: (..., K)   w: (K, N)   b: (N,) / (1, N)."""
    orig_shape = x.shape
    K = orig_shape[-1]
    x2 = x.reshape(-1, K)
    M = x2.shape[0]
    K2, N = w.shape
    assert K == K2, "inner dims must match"
    b2 = b.reshape(1, N)

    out_dtype = x.dtype
    itemsize = jnp.dtype(x.dtype).itemsize
    # Opt-in only: changes numerics (bf16 MXU inputs, f32 accumulate/epilogue).
    compute_dtype = jnp.bfloat16 if use_bf16_matmul else x.dtype

    vmem_cap = _vmem_capacity_bytes()
    budget = int(0.70 * vmem_cap)         # leave headroom for compiler scratch

    sub = _sublane(x.dtype)
    tm = _pick_tm(M, sub, tm_target)
    tn = _pick_tn(N, tn_target)
    tk = _pick_tk(K)

    total_bytes = (M * K + K * N + N + M * N) * itemsize
    # Real VMEM footprints (2x = default double-buffering of every operand).
    resident_bytes = 2 * (K * N + N + tm * K + tm * N) * itemsize
    coltile_bytes = 2 * (tm * K + K * tn + tn + tm * tn) * itemsize

    path = force_path
    if path is None:
        if total_bytes <= single_shot_bytes:
            path = "single"
        elif resident_bytes <= budget:
            path = "resident"
        elif coltile_bytes <= budget:
            path = "coltile"
        else:
            path = "ktile"

    kern = functools.partial(linear_relu_kernel, compute_dtype=compute_dtype)

    # ---- Path "single": tiny problem, no grid, everything VMEM-resident ---- #
    if path == "single":
        out = pl.pallas_call(
            kern,
            out_shape=jax.ShapeDtypeStruct((M, N), out_dtype),
            in_specs=[pl.BlockSpec(memory_space=pltpu.MemorySpace.VMEM)] * 3,
            out_specs=pl.BlockSpec(memory_space=pltpu.MemorySpace.VMEM),
        )(x2, w, b2)
        return out.reshape(orig_shape[:-1] + (N,))

    grid_m = _cdiv(M, tm)

    # ---- Path "resident": W and b DMA'd once, only x / out stream ---------- #
    if path == "resident":
        # No padding: ragged last M block handled by Pallas (OOB rows dropped).
        # TODO(synk): mark W/b with pipeline_mode=pl.Buffered(1) (constant
        # index_map needs no double buffer) once verified on the target jax.
        out = pl.pallas_call(
            kern,
            out_shape=jax.ShapeDtypeStruct((M, N), out_dtype),
            grid_spec=pltpu.PrefetchScalarGridSpec(
                num_scalar_prefetch=0,
                grid=(grid_m,),
                in_specs=[
                    pl.BlockSpec((tm, K), lambda i: (i, 0)),
                    pl.BlockSpec((K, N), lambda i: (0, 0)),   # resident weight
                    pl.BlockSpec((1, N), lambda i: (0, 0)),   # resident bias
                ],
                out_specs=pl.BlockSpec((tm, N), lambda i: (i, 0)),
            ),
            compiler_params=pltpu.CompilerParams(
                dimension_semantics=("parallel",),
                vmem_limit_bytes=_vmem_limit(resident_bytes, vmem_cap),
            ),
        )(x2, w, b2)
        return out.reshape(orig_shape[:-1] + (N,))

    grid_n = _cdiv(N, tn)

    # ---- Path "coltile": whole-K blocks, W column-tiled --------------------- #
    if path == "coltile":
        # Grid order chosen so the larger operand is read from HBM exactly once:
        # small-batch / large-weight -> M innermost, each (K, tn) weight tile
        # stays VMEM-resident across the whole M sweep.
        weight_major = (K * N) >= (M * K)
        if weight_major:
            grid = (grid_n, grid_m)
            in_specs = [
                pl.BlockSpec((tm, K), lambda j, i: (i, 0)),
                pl.BlockSpec((K, tn), lambda j, i: (0, j)),
                pl.BlockSpec((1, tn), lambda j, i: (0, j)),
            ]
            out_specs = pl.BlockSpec((tm, tn), lambda j, i: (i, j))
        else:
            grid = (grid_m, grid_n)
            in_specs = [
                pl.BlockSpec((tm, K), lambda i, j: (i, 0)),
                pl.BlockSpec((K, tn), lambda i, j: (0, j)),
                pl.BlockSpec((1, tn), lambda i, j: (0, j)),
            ]
            out_specs = pl.BlockSpec((tm, tn), lambda i, j: (i, j))
        out = pl.pallas_call(
            kern,
            out_shape=jax.ShapeDtypeStruct((M, N), out_dtype),
            grid_spec=pltpu.PrefetchScalarGridSpec(
                num_scalar_prefetch=0, grid=grid,
                in_specs=in_specs, out_specs=out_specs,
            ),
            compiler_params=pltpu.CompilerParams(
                dimension_semantics=("parallel", "parallel"),
                vmem_limit_bytes=_vmem_limit(coltile_bytes, vmem_cap),
            ),
        )(x2, w, b2)
        return out.reshape(orig_shape[:-1] + (N,))

    # ---- Path "ktile": fully tiled (tm,tk)x(tk,tn) + f32 accumulator -------- #
    def _ktile_bytes(tm_, tn_, tk_):
        return (2 * (tm_ * tk_ + tk_ * tn_ + tn_ + tm_ * tn_) * itemsize
                + tm_ * tn_ * 4)                       # accumulator scratch

    while _ktile_bytes(tm, tn, tk) > budget and tn > 128:
        tn = max(128, _floor_to(tn // 2, 128))
    while _ktile_bytes(tm, tn, tk) > budget and tm > sub:
        tm = max(sub, _ceil_to(tm // 2, sub))
    grid_m = _cdiv(M, tm)
    grid_n = _cdiv(N, tn)
    grid_k = _cdiv(K, tk)      # tk divides K (or equals it), so K never ragged

    kern_k = functools.partial(linear_relu_ktiled_kernel,
                               compute_dtype=compute_dtype)
    out = pl.pallas_call(
        kern_k,
        out_shape=jax.ShapeDtypeStruct((M, N), out_dtype),
        grid_spec=pltpu.PrefetchScalarGridSpec(
            num_scalar_prefetch=0,
            grid=(grid_m, grid_n, grid_k),
            in_specs=[
                pl.BlockSpec((tm, tk), lambda i, j, k: (i, k)),
                pl.BlockSpec((tk, tn), lambda i, j, k: (k, j)),
                pl.BlockSpec((1, tn), lambda i, j, k: (0, j)),
            ],
            out_specs=pl.BlockSpec((tm, tn), lambda i, j, k: (i, j)),
            scratch_shapes=[pltpu.VMEM((tm, tn), jnp.float32)],
        ),
        compiler_params=pltpu.CompilerParams(
            dimension_semantics=("parallel", "parallel", "arbitrary"),
            vmem_limit_bytes=_vmem_limit(_ktile_bytes(tm, tn, tk), vmem_cap),
        ),
    )(x2, w, b2)
    return out.reshape(orig_shape[:-1] + (N,))


# --------------------------------------------------------------------------- #
# Demo / self-test
# --------------------------------------------------------------------------- #
if __name__ == "__main__":
    # Small shapes consistent with the module: batch=16, input_dim=64, output_dim=256.
    batch, input_dim, output_dim = 16, 64, 256

    key = jax.random.PRNGKey(0)
    kx, kw, kb = jax.random.split(key, 3)

    # nn.Linear-style init: U(-1/sqrt(in), 1/sqrt(in)). Weight kept as (in, out).
    bound = 1.0 / (input_dim ** 0.5)
    w = jax.random.uniform(kw, (input_dim, output_dim), jnp.float32, -bound, bound)
    b = jax.random.uniform(kb, (output_dim,), jnp.float32, -bound, bound)
    x = jax.random.normal(kx, (batch, input_dim), jnp.float32)

    # Reference (plain JAX).
    y_ref = jnp.maximum(x @ w + b[None, :], 0.0)

    # Exercise every code path on the same data and check against the reference.
    for path in (None, "single", "resident", "coltile", "ktile"):
        y = jax.block_until_ready(x_to_z_forward(x, w, b, force_path=path))
        assert y.shape == (batch, output_dim), path
        assert jnp.allclose(y, y_ref, atol=1e-5, rtol=1e-5), path

    print("KERNEL_OK")
</pallas_src>

<mosaic_0001>
module attributes {stable_mosaic.version = 11 : i64} {
  func.func @linear_relu_kernel(%arg0: memref<16x64xf32, #tpu.memory_space<vmem>>, %arg1: memref<64x256xf32, #tpu.memory_space<vmem>>, %arg2: memref<1x256xf32, #tpu.memory_space<vmem>>, %arg3: memref<16x256xf32, #tpu.memory_space<vmem>>) attributes {dimension_semantics = [], scalar_prefetch = 0 : i64, scratch_operands = 0 : i64, tpu.core_type = #tpu.core_type<tc>} {
    %c0 = arith.constant 0 : index
    %c0_0 = arith.constant 0 : index
    %0 = vector.load %arg0[%c0, %c0_0] : memref<16x64xf32, #tpu.memory_space<vmem>>, vector<16x64xf32>
    %c0_1 = arith.constant 0 : index
    %c0_2 = arith.constant 0 : index
    %1 = vector.load %arg1[%c0_1, %c0_2] : memref<64x256xf32, #tpu.memory_space<vmem>>, vector<64x256xf32>
    %cst = arith.constant dense<0.000000e+00> : vector<16x256xf32>
    %2 = tpu.matmul %0, %1, %cst {dimension_numbers = #tpu.dot_dimension_numbers<[1], [0], [0], [1], [0, 0, 1, 1], [], []>} : vector<16x64xf32>, vector<64x256xf32>, vector<16x256xf32> -> vector<16x256xf32>
    %c0_3 = arith.constant 0 : index
    %c0_4 = arith.constant 0 : index
    %3 = vector.load %arg2[%c0_3, %c0_4] : memref<1x256xf32, #tpu.memory_space<vmem>>, vector<1x256xf32>
    %4 = vector.broadcast %3 : vector<1x256xf32> to vector<16x256xf32>
    %5 = arith.addf %2, %4 : vector<16x256xf32>
    %cst_5 = arith.constant 0.000000e+00 : f32
    %6 = vector.broadcast %cst_5 : f32 to vector<16x256xf32>
    %7 = arith.maximumf %5, %6 : vector<16x256xf32>
    %c0_6 = arith.constant 0 : index
    %c0_7 = arith.constant 0 : index
    %8 = vector.load %arg3[%c0_6, %c0_7] : memref<16x256xf32, #tpu.memory_space<vmem>>, vector<16x256xf32>
    tpu.vector_store %arg3[%c0_6, %c0_7], %7 {strides = array<i32>} : memref<16x256xf32, #tpu.memory_space<vmem>>, vector<16x256xf32>,
    return
  }
}

</mosaic_0001>

<bundles_post_ra>
// kernel: tpu_custom_call.1
= control target key start
LH: loop header
LB: loop body
LE: loop exit
PB: predicated region body
PF: predicated region fallthrough
CT: control target
= control target key end

     0   :  { %8 = vsyncpa [#allocation3], 0  ;;  %s321_s0 = inlined_call_operand.hbm [shape: f32[16,64], index: 0, kind: input, shape index: {}]   ;;  %s322_s1 = inlined_call_operand.hbm [shape: f32[64,256], index: 1, kind: input, shape index: {}]   ;;  %s323_s2 = inlined_call_operand.vmem [shape: f32[1,256], index: 2, kind: input, shape index: {}]   ;;  %s324_s3 = inlined_call_operand.hbm [shape: f32[16,256], index: 3, kind: output, shape index: {}]  }
   0x1   :  { %9 = vsyncpa [#allocation6], 0 }
   0x2   :  { %10 = vsyncpa [#allocation4], 0  ;;  %s275_s12 = smov [#allocation2]  }
   0x3   :  { %s16_s13 = sshll.u32 %s275_s12, 4  ;;  %s17_s13 = int_to_ptr.vmem [resolvable:$true] %s16_s13 }
   0x4   :  { %s217_s14 = scalar_lea.vmem %s17_s13, 256  ;;  %p222_p1 = scmp.lt.s32.totalorder %s17_s13, %s17_s13 }
   0x5   :  { %p218_p0 = scmp.ne.s32.totalorder %s17_s13, %s217_s14  ;;  %p223_p2 = scmp.lt.s32.totalorder %s217_s14, %s217_s14 }
   0x7   :  { %p224_p3 = por %p223_p2, %p222_p1 }
   0x9   :  { %p225_p4 = pnand %p224_p3, %p218_p0 }
   0xb   :  { %228 = shalt.err (!%p225_p4)
}
   0xc   :  { %s276_s15 = smov 128   ;;  %s277_s16 = smov 8  }
   0xd   :  { %22 = dma.hbm_to_vmem [thread:$0]  %s321_s0, 256, %s17_s13, [#allocation3], %s276_s15, %s276_s15, %s277_s16  }
   0xe   :  { %s278_s19 = smov [#allocation5]  }
   0xf   :  { %s28_s20 = sshll.u32 %s278_s19, 4  ;;  %s29_s20 = int_to_ptr.vmem [resolvable:$true] %s28_s20 }
  0x10   :  { %s237_s21 = scalar_lea.vmem %s29_s20, 2048  ;;  %p242_p6 = scmp.lt.s32.totalorder %s29_s20, %s29_s20 }
  0x11   :  { %p238_p5 = scmp.ne.s32.totalorder %s29_s20, %s237_s21  ;;  %p243_p7 = scmp.lt.s32.totalorder %s237_s21, %s237_s21 }
  0x13   :  { %p244_p8 = por %p243_p7, %p242_p6 }
  0x15   :  { %p245_p9 = pnand %p244_p8, %p238_p5 }
  0x17   :  { %248 = shalt.err (!%p245_p9)
}
  0x18   :  { %s279_s22 = smov 256   ;;  %s280_s23 = smov 16  }
  0x19   :  { %34 = dma.hbm_to_vmem [thread:$0]  %s322_s1, 2048, %s29_s20, [#allocation6], %s279_s22, %s279_s22, %s280_s23  }
  0x1a   :  { %269 = dma.done.wait [#allocation3], 256  }
  0x1b   :  { %270 = vsyncadd [#allocation3], 4294967040 }
  0x1c   :  { %271 = dma.done.wait [#allocation6], 2048  }
  0x1d   :  { %272 = vsyncadd [#allocation6], 4294965248  ;;  %v281_v0 = vmov 0.0   ;;  %v60_v1 = vld [vmem:[#allocation5 + $0x78] sm:$0xff]  ;;  %v59_v2 = vld [vmem:[#allocation5 + $0x70] sm:$0xff]  ;;  %vm73_vm0 = vcmask 523264   ;;  %v63_v19 = vlaneseq }
  0x1e   :  { %144 = vmatprep.mubr.f32.mxu0 %v281_v0  ;;  %150 = vmatprep.mubr.f32.mxu1 %v281_v0  ;;  %v58_v3 = vld [vmem:[#allocation5 + $0x68] sm:$0xff]  ;;  %v57_v4 = vld [vmem:[#allocation5 + $0x60] sm:$0xff]  ;;  %v56_v5 = vld [vmem:[#allocation5 + $0x58] sm:$0xff]  ;;  %s282_s26 = smov [#allocation7]  }
  0x1f   :  { %96 = vmatprep.subr.mxu0 %v60_v1  ;;  %185 = vmatprep.subr.mxu1 %v60_v1  ;;  %v55_v6 = vld [vmem:[#allocation5 + $0x50] sm:$0xff]  ;;  %v54_v7 = vld [vmem:[#allocation5 + $0x48] sm:$0xff]  ;;  %v53_v8 = vld [vmem:[#allocation5 + $0x40] sm:$0xff]  ;;  %v64_v20 = vshrl.u32 %v63_v19, 7  ;;  %s170_s27 = sshll.u32 %s282_s26, 4  ;;  %s171_s27 = int_to_ptr.vmem [resolvable:$true] %s170_s27 }
  0x20   :  { %97 = vmatpush1.msra.mxu0 %v59_v2  ;;  %193 = vmatpush1.msra.mxu1 %v59_v2  ;;  %v52_v9 = vld [vmem:[#allocation5 + $0x38] sm:$0xff]  ;;  %v51_v10 = vld [vmem:[#allocation5 + $0x30] sm:$0xff]  ;;  %v50_v11 = vld [vmem:[#allocation5 + $0x28] sm:$0xff]  ;;  %p254_p11 = scmp.lt.s32.totalorder %s171_s27, %s171_s27 }
  0x21   :  { %98 = vmatprep.subr.mxu0 %v58_v3  ;;  %186 = vmatprep.subr.mxu1 %v58_v3  ;;  %v49_v12 = vld [vmem:[#allocation5 + $0x20] sm:$0xff]  ;;  %v48_v13 = vld [vmem:[#allocation5 + $0x18] sm:$0xff]  ;;  %v47_v14 = vld [vmem:[#allocation5 + $0x10] sm:$0xff]  ;;  %v65_v21 = vsub.s32 0, %v64_v20  ;;  %v69_v23 = vsub.s32 1, %v64_v20 }
  0x22   :  { %99 = vmatpush1.msra.mxu0 %v57_v4  ;;  %194 = vmatpush1.msra.mxu1 %v57_v4  ;;  %v46_v15 = vld [vmem:[#allocation5 + $0x8] sm:$0xff]  ;;  %v45_v16 = vld [vmem:[#allocation5] sm:$0xff]  ;;  %v43_v17 = vld [vmem:[#allocation2] sm:$0xff] }
  0x23   :  { %100 = vmatprep.subr.mxu0 %v56_v5  ;;  %187 = vmatprep.subr.mxu1 %v56_v5  ;;  %v44_v18 = vld [vmem:[#allocation2 + $0x8] sm:$0xff]  ;;  %v61_v22 = vld [vmem:[%s323_s2] sm:$0x3]  ;;  %s249_s2 = scalar_lea.vmem %s171_s27, 512 }
  0x24   :  { %101 = vmatpush1.msra.mxu0 %v55_v6  ;;  %195 = vmatpush1.msra.mxu1 %v55_v6  ;;  %v66_v24 = vrot.slane %v61_v22, %v65_v21  ;;  %v70_v25 = vrot.slane %v61_v22, %v69_v23  ;;  %p250_p10 = scmp.ne.s32.totalorder %s171_s27, %s249_s2  ;;  %p255_p12 = scmp.lt.s32.totalorder %s249_s2, %s249_s2 }
  0x25   :  { %102 = vmatprep.subr.mxu0 %v54_v7  ;;  %188 = vmatprep.subr.mxu1 %v54_v7 }
  0x26   :  { %103 = vmatpush1.msra.mxu0 %v53_v8  ;;  %196 = vmatpush1.msra.mxu1 %v53_v8  ;;  %p256_p13 = por %p255_p12, %p254_p11 }
  0x27   :  { %104 = vmatprep.subr.mxu0 %v52_v9  ;;  %189 = vmatprep.subr.mxu1 %v52_v9 }
  0x28   :  { %105 = vmatpush1.msra.mxu0 %v51_v10  ;;  %197 = vmatpush1.msra.mxu1 %v51_v10  ;;  %p257_p0 = pnand %p256_p13, %p250_p10 }
  0x29   :  { %106 = vmatprep.subr.mxu0 %v50_v11  ;;  %190 = vmatprep.subr.mxu1 %v50_v11 }
  0x2a   :  { %107 = vmatpush1.msra.mxu0 %v49_v12  ;;  %198 = vmatpush1.msra.mxu1 %v49_v12 }
  0x2b   :  { %108 = vmatprep.subr.mxu0 %v48_v13  ;;  %191 = vmatprep.subr.mxu1 %v48_v13 }
  0x2c   :  { %109 = vmatpush1.msra.mxu0 %v47_v14  ;;  %199 = vmatpush1.msra.mxu1 %v47_v14 }
  0x2d   :  { %110 = vmatprep.subr.mxu0 %v46_v15  ;;  %192 = vmatprep.subr.mxu1 %v46_v15 }
  0x2e   :  { %111 = vmatpush1.msra.mxu0 %v45_v16  ;;  %200 = vmatpush1.msra.mxu1 %v45_v16 }
  0x2f   :  { %183 = vmatmul.mubr.msk.f32.vlgmr.msra.gmra.mxu0 %vm73_vm0, %v43_v17  ;;  %184 = vmatmul.mubr.msk.f32.vlgmr.msra.gmra.mxu1 %vm73_vm0, %v44_v18 }
  0xef   :  { %v146_v26 = vpop.f32.mrf.mxu0  ;;  %v152_v27 = vpop.f32.mrf.mxu1 }
  0xf0   :  { %v147_v28 = vadd.f32 %v146_v26, %v66_v24  ;;  %v153_v29 = vadd.f32 %v152_v27, %v66_v24 }
  0xf1   :  { %v148_v30 = vpop.f32.mrf.mxu0  ;;  %v154_v31 = vpop.f32.mrf.mxu1 }
  0xf2   :  { %v157_v32 = vmax.f32 %v147_v28, 0.0  ;;  %v159_v33 = vmax.f32 %v153_v29, 0.0  ;;  %v149_v34 = vadd.f32 %v148_v30, %v70_v25  ;;  %v155_v35 = vadd.f32 %v154_v31, %v70_v25 }
  0xf4   :  { %161 = vst [vmem:[#allocation7] sm:$0xff] %v157_v32  ;;  %163 = vst [vmem:[#allocation7 + $0x10] sm:$0xff] %v159_v33  ;;  %v158_v36 = vmax.f32 %v149_v34, 0.0  ;;  %v160_v37 = vmax.f32 %v155_v35, 0.0 }
  0xf6   :  { %162 = vst [vmem:[#allocation7 + $0x8] sm:$0xff] %v158_v36  ;;  %164 = vst [vmem:[#allocation7 + $0x18] sm:$0xff] %v160_v37 }
  0xf7   :  { %260 = shalt.err (!%p257_p0)
}
  0xf8   :  { %176 = dma.vmem_to_hbm [thread:$0]  %s171_s27, 512, %s324_s3, [#allocation4], %s279_s22, %s279_s22, %s280_s23  }
  0xf9   :  { %273 = dma.done.wait [#allocation4], 512  }
  0xfa   :  { %274 = vsyncadd [#allocation4], 4294966784 }
  0xfb   :  { %180 = vsyncpa [#allocation3], 1 }
  0xfc   :  { %181 = vsyncpa [#allocation6], 1 }
  0xfd   :  { %182 = vsyncpa [#allocation4], 1 }

</bundles_post_ra>
